<compile_context>
chip_gen: v6e
topology: v6e:2x2x1
jax: 0.10.0
libtpu: 0.0.40
codegen_flags: <defaults>
</compile_context>

<pallas_src>
import functools

import jax
import jax.numpy as jnp
import numpy as np
from jax import lax
from jax.experimental import pallas as pl
from jax.experimental.pallas import tpu as pltpu

# ----------------------------- model dimensions -----------------------------
B = 2                      # batch
H = W = 32                 # input spatial (module default input_size=32)
KH = KW = 6                # conv kernel
STRIDE = 2
CONV_OUT = (H - KH) // STRIDE + 1      # 14
POOL_OUT = CONV_OUT // 2               # 7
C_OUT = 7                  # conv out channels
FC_IN = C_OUT * POOL_OUT * POOL_OUT    # 343
HID = 64
OUT = 32

SLAB_W = 2 * STRIDE * (POOL_OUT - 1) + KW   # 30 input cols per row-slab
K_SLAB = KH * SLAB_W                        # 180 taps per patch row
PH_PAD = 8                                  # pool rows padded 7 -> 8 (sublane-aligned groups)
N_CONV = POOL_OUT * C_OUT                   # 49 conv columns (pw*7 + c)


# ------------------------------ fused kernel --------------------------------

def _fused_kernel(nb, p_ref, wexp_ref, bexp_ref, a1_ref,
                  w1c_ref, b1_ref, a2_ref, w2_ref, b2_ref, o_ref):
    """Conv + PReLU + MaxPool + Linear + PReLU + Linear, all in one body.

    p_ref:    [4*PH_PAD*nb, 180]  row-slab patches; row = ((dy*2+dx)*8 + ph)*nb + b
    wexp_ref: [180, 49]           expanded conv weight, cols = pw*7 + c
    bexp_ref: [1, 49]             conv bias tiled per pw
    a1_ref:   [1, 1]              PReLU slope (encoder)
    w1c_ref:  [7, 49, 64]         fc1 weight chunked by ph, rows ordered (pw, c)
    b1_ref:   [1, 64]
    a2_ref:   [1, 1]              PReLU slope (head)
    w2_ref:   [64, 32]
    b2_ref:   [1, 32]
    o_ref:    [nb, 32]
    """
    a1 = a1_ref[0, 0]
    a2 = a2_ref[0, 0]
    gp = PH_PAD * nb                      # rows per pool-offset group (16 for nb=2)

    # Conv as ONE stacked matmul over all 4 pool offsets; bias + PReLU applied once.
    y = jnp.dot(p_ref[...], wexp_ref[...], preferred_element_type=jnp.float32)
    y = y + bexp_ref[...]
    y = jnp.where(y >= 0.0, y, a1 * y)    # PReLU before pooling (matches Sequential)

    # 2x2 max-pool == elementwise max over the 4 pool-offset row groups.
    pooled = jnp.maximum(jnp.maximum(y[0 * gp:1 * gp], y[1 * gp:2 * gp]),
                         jnp.maximum(y[2 * gp:3 * gp], y[3 * gp:4 * gp]))  # [gp, 49]

    # fc1 accumulated over the 7 pool rows: each chunk is a [nb,49] x [49,64] matmul.
    h = jnp.zeros((nb, HID), jnp.float32)
    for ph in range(POOL_OUT):
        h = h + jnp.dot(pooled[ph * nb:(ph + 1) * nb, :], w1c_ref[ph],
                        preferred_element_type=jnp.float32)
    h = h + b1_ref[...]
    h = jnp.where(h >= 0.0, h, a2 * h)    # PReLU

    o_ref[...] = jnp.dot(h, w2_ref[...], preferred_element_type=jnp.float32) + b2_ref[...]


# --------------------------- one-time param prep -----------------------------

def prepare_params(params):
    """Hoisted parameter re-layout (run once, outside the per-call path)."""
    wconv, bconv, a1, w1, b1, a2, w2, b2 = (np.asarray(p, np.float32) for p in params)

    # Expanded row-slab conv weight:
    #   wexp[ki*30 + (4*pw + kj), pw*7 + c] = wconv[c, 0, ki, kj]   (zero elsewhere)
    wexp = np.zeros((K_SLAB, N_CONV), np.float32)
    for pw in range(POOL_OUT):
        j0 = 2 * STRIDE * pw
        for c in range(C_OUT):
            for ki in range(KH):
                wexp[ki * SLAB_W + j0: ki * SLAB_W + j0 + KW, pw * C_OUT + c] = wconv[c, 0, ki, :]

    # Conv bias tiled over pool columns:  bexp[pw*7 + c] = bconv[c]
    bexp = np.tile(bconv, POOL_OUT).reshape(1, N_CONV)

    # fc1 weight: PyTorch flattens (c, ph, pw); regroup into [ph, (pw, c), out].
    w1t = w1.T.reshape(C_OUT, POOL_OUT, POOL_OUT, HID)            # (c, ph, pw, o)
    w1c = np.transpose(w1t, (1, 2, 0, 3)).reshape(POOL_OUT, N_CONV, HID)

    return (jnp.asarray(wexp), jnp.asarray(bexp),
            jnp.asarray(a1.reshape(1, 1)),
            jnp.asarray(w1c), jnp.asarray(b1.reshape(1, HID)),
            jnp.asarray(a2.reshape(1, 1)),
            jnp.asarray(np.ascontiguousarray(w2.T)),
            jnp.asarray(b2.reshape(1, OUT)))


# ------------------------------- forward pass --------------------------------

def encoder_forward(x, prepared):
    """x: [B, 1, 32, 32] float32 -> [B, 32] float32 (matches PyTorch forward)."""
    nb = x.shape[0]

    # im2col row-slabs with a single XLA patches op:
    #   pr[b, ki*30 + j, r, s] = x[b, 0, 2*r + ki, 2*s + j],  r = 2*ph + dy, s = dx
    pr = lax.conv_general_dilated_patches(
        x, filter_shape=(KH, SLAB_W), window_strides=(STRIDE, STRIDE),
        padding="VALID", dimension_numbers=("NCHW", "OIHW", "NCHW"),
        precision=lax.Precision.HIGHEST)                  # [nb, 180, 14, 2]
    p = pr.reshape(nb, K_SLAB, POOL_OUT, 2, 2)            # [b, k, ph, dy, dx]
    p = jnp.transpose(p, (3, 4, 2, 0, 1))                 # [dy, dx, ph, b, k]
    p = jnp.pad(p, ((0, 0), (0, 0), (0, PH_PAD - POOL_OUT), (0, 0), (0, 0)))
    patches = p.reshape(4 * PH_PAD * nb, K_SLAB)          # [64, 180]

    kernel = functools.partial(_fused_kernel, nb)
    vmem = lambda n: [pl.BlockSpec(memory_space=pltpu.MemorySpace.VMEM) for _ in range(n)]
    return pl.pallas_call(
        kernel,
        out_shape=jax.ShapeDtypeStruct((nb, OUT), jnp.float32),
        in_specs=vmem(9),
        out_specs=pl.BlockSpec(memory_space=pltpu.MemorySpace.VMEM),
    )(patches, *prepared)


# ------------------------- params / pure-JAX reference ---------------------

def init_params(key):
    ks = jax.random.split(key, 6)
    wconv = jax.random.normal(ks[0], (C_OUT, 1, KH, KW), jnp.float32) * 0.1
    bconv = jax.random.normal(ks[1], (C_OUT,), jnp.float32) * 0.1
    a1 = jnp.full((1,), 0.25, jnp.float32)                # PReLU default init
    w1 = jax.random.normal(ks[2], (HID, FC_IN), jnp.float32) * 0.05
    b1 = jax.random.normal(ks[3], (HID,), jnp.float32) * 0.05
    a2 = jnp.full((1,), 0.25, jnp.float32)
    w2 = jax.random.normal(ks[4], (OUT, HID), jnp.float32) * 0.05
    b2 = jax.random.normal(ks[5], (OUT,), jnp.float32) * 0.05
    return (wconv, bconv, a1, w1, b1, a2, w2, b2)


def reference_forward(x, params):
    wconv, bconv, a1, w1, b1, a2, w2, b2 = params
    conv = lax.conv_general_dilated(
        x, wconv, window_strides=(STRIDE, STRIDE), padding="VALID",
        dimension_numbers=("NCHW", "OIHW", "NCHW"),
        precision=lax.Precision.HIGHEST)
    conv = conv + bconv[None, :, None, None]
    conv = jnp.where(conv >= 0.0, conv, a1[0] * conv)
    pooled = lax.reduce_window(conv, -jnp.inf, lax.max,
                               (1, 1, 2, 2), (1, 1, 2, 2), "VALID")
    flat = pooled.reshape(x.shape[0], -1)                 # PyTorch (C, H, W) flatten
    h = jnp.dot(flat, w1.T, precision=lax.Precision.HIGHEST) + b1
    h = jnp.where(h >= 0.0, h, a2[0] * h)
    return jnp.dot(h, w2.T, precision=lax.Precision.HIGHEST) + b2


# --------------------------------- main -------------------------------------

if __name__ == "__main__":
    key = jax.random.PRNGKey(0)
    k_x, k_p = jax.random.split(key)
    x = jax.random.normal(k_x, (B, 1, H, W), jnp.float32)
    params = init_params(k_p)

    prepared = prepare_params(params)          # parameter re-layout: done exactly once
    fwd = jax.jit(encoder_forward)             # one program: patches op + fused kernel

    out = jax.block_until_ready(fwd(x, prepared))

    ref = jax.block_until_ready(reference_forward(x, params))
    np.testing.assert_allclose(np.asarray(out), np.asarray(ref), rtol=1e-4, atol=1e-4)

    assert out.shape == (B, OUT) and out.dtype == jnp.float32
    print("KERNEL_OK")
</pallas_src>

<mosaic_0001>
module attributes {stable_mosaic.version = 11 : i64} {
  func.func @_fused_kernel(%arg0: memref<64x180xf32, #tpu.memory_space<vmem>>, %arg1: memref<180x49xf32, #tpu.memory_space<vmem>>, %arg2: memref<1x49xf32, #tpu.memory_space<vmem>>, %arg3: memref<1x1xf32, #tpu.memory_space<vmem>>, %arg4: memref<7x49x64xf32, #tpu.memory_space<vmem>>, %arg5: memref<1x64xf32, #tpu.memory_space<vmem>>, %arg6: memref<1x1xf32, #tpu.memory_space<vmem>>, %arg7: memref<64x32xf32, #tpu.memory_space<vmem>>, %arg8: memref<1x32xf32, #tpu.memory_space<vmem>>, %arg9: memref<2x32xf32, #tpu.memory_space<vmem>>) attributes {dimension_semantics = [], scalar_prefetch = 0 : i64, scratch_operands = 0 : i64, tpu.core_type = #tpu.core_type<tc>} {
    %c0 = arith.constant 0 : index
    %c0_0 = arith.constant 0 : index
    %0 = vector.load %arg3[%c0, %c0_0] : memref<1x1xf32, #tpu.memory_space<vmem>>, vector<1x1xf32>
    %1 = vector.extract %0[0, 0] : f32 from vector<1x1xf32>
    %c0_1 = arith.constant 0 : index
    %c0_2 = arith.constant 0 : index
    %2 = vector.load %arg6[%c0_1, %c0_2] : memref<1x1xf32, #tpu.memory_space<vmem>>, vector<1x1xf32>
    %3 = vector.extract %2[0, 0] : f32 from vector<1x1xf32>
    %c0_3 = arith.constant 0 : index
    %c0_4 = arith.constant 0 : index
    %4 = vector.load %arg0[%c0_3, %c0_4] : memref<64x180xf32, #tpu.memory_space<vmem>>, vector<64x180xf32>
    %c0_5 = arith.constant 0 : index
    %c0_6 = arith.constant 0 : index
    %5 = vector.load %arg1[%c0_5, %c0_6] : memref<180x49xf32, #tpu.memory_space<vmem>>, vector<180x49xf32>
    %cst = arith.constant dense<0.000000e+00> : vector<64x49xf32>
    %6 = tpu.matmul %4, %5, %cst {dimension_numbers = #tpu.dot_dimension_numbers<[1], [0], [0], [1], [0, 0, 1, 1], [], []>} : vector<64x180xf32>, vector<180x49xf32>, vector<64x49xf32> -> vector<64x49xf32>
    %c0_7 = arith.constant 0 : index
    %c0_8 = arith.constant 0 : index
    %7 = vector.load %arg2[%c0_7, %c0_8] : memref<1x49xf32, #tpu.memory_space<vmem>>, vector<1x49xf32>
    %8 = vector.broadcast %7 : vector<1x49xf32> to vector<64x49xf32>
    %9 = arith.addf %6, %8 : vector<64x49xf32>
    %cst_9 = arith.constant 0.000000e+00 : f32
    %10 = vector.broadcast %cst_9 : f32 to vector<64x49xf32>
    %11 = arith.cmpf oge, %9, %10 : vector<64x49xf32>
    %12 = vector.broadcast %1 : f32 to vector<64x49xf32>
    %13 = arith.mulf %12, %9 : vector<64x49xf32>
    %14 = arith.select %11, %9, %13 : vector<64x49xi1>, vector<64x49xf32>
    %15 = vector.extract_strided_slice %14 {offsets = [0, 0], sizes = [16, 49], strides = [1, 1]} : vector<64x49xf32> to vector<16x49xf32>
    %16 = vector.extract_strided_slice %14 {offsets = [16, 0], sizes = [16, 49], strides = [1, 1]} : vector<64x49xf32> to vector<16x49xf32>
    %17 = arith.maximumf %15, %16 : vector<16x49xf32>
    %18 = vector.extract_strided_slice %14 {offsets = [32, 0], sizes = [16, 49], strides = [1, 1]} : vector<64x49xf32> to vector<16x49xf32>
    %19 = vector.extract_strided_slice %14 {offsets = [48, 0], sizes = [16, 49], strides = [1, 1]} : vector<64x49xf32> to vector<16x49xf32>
    %20 = arith.maximumf %18, %19 : vector<16x49xf32>
    %21 = arith.maximumf %17, %20 : vector<16x49xf32>
    %cst_10 = arith.constant 0.000000e+00 : f32
    %22 = vector.broadcast %cst_10 : f32 to vector<2x64xf32>
    %23 = vector.extract_strided_slice %21 {offsets = [0, 0], sizes = [2, 49], strides = [1, 1]} : vector<16x49xf32> to vector<2x49xf32>
    %c0_11 = arith.constant 0 : index
    %c0_12 = arith.constant 0 : index
    %c0_13 = arith.constant 0 : index
    %24 = vector.load %arg4[%c0_11, %c0_12, %c0_13] : memref<7x49x64xf32, #tpu.memory_space<vmem>>, vector<1x49x64xf32>
    %25 = vector.shape_cast %24 : vector<1x49x64xf32> to vector<49x64xf32>
    %cst_14 = arith.constant dense<0.000000e+00> : vector<2x64xf32>
    %26 = tpu.matmul %23, %25, %cst_14 {dimension_numbers = #tpu.dot_dimension_numbers<[1], [0], [0], [1], [0, 0, 1, 1], [], []>} : vector<2x49xf32>, vector<49x64xf32>, vector<2x64xf32> -> vector<2x64xf32>
    %27 = arith.addf %22, %26 : vector<2x64xf32>
    %28 = vector.extract_strided_slice %21 {offsets = [2, 0], sizes = [2, 49], strides = [1, 1]} : vector<16x49xf32> to vector<2x49xf32>
    %c1 = arith.constant 1 : index
    %c0_15 = arith.constant 0 : index
    %c0_16 = arith.constant 0 : index
    %29 = vector.load %arg4[%c1, %c0_15, %c0_16] : memref<7x49x64xf32, #tpu.memory_space<vmem>>, vector<1x49x64xf32>
    %30 = vector.shape_cast %29 : vector<1x49x64xf32> to vector<49x64xf32>
    %cst_17 = arith.constant dense<0.000000e+00> : vector<2x64xf32>
    %31 = tpu.matmul %28, %30, %cst_17 {dimension_numbers = #tpu.dot_dimension_numbers<[1], [0], [0], [1], [0, 0, 1, 1], [], []>} : vector<2x49xf32>, vector<49x64xf32>, vector<2x64xf32> -> vector<2x64xf32>
    %32 = arith.addf %27, %31 : vector<2x64xf32>
    %33 = vector.extract_strided_slice %21 {offsets = [4, 0], sizes = [2, 49], strides = [1, 1]} : vector<16x49xf32> to vector<2x49xf32>
    %c2 = arith.constant 2 : index
    %c0_18 = arith.constant 0 : index
    %c0_19 = arith.constant 0 : index
    %34 = vector.load %arg4[%c2, %c0_18, %c0_19] : memref<7x49x64xf32, #tpu.memory_space<vmem>>, vector<1x49x64xf32>
    %35 = vector.shape_cast %34 : vector<1x49x64xf32> to vector<49x64xf32>
    %cst_20 = arith.constant dense<0.000000e+00> : vector<2x64xf32>
    %36 = tpu.matmul %33, %35, %cst_20 {dimension_numbers = #tpu.dot_dimension_numbers<[1], [0], [0], [1], [0, 0, 1, 1], [], []>} : vector<2x49xf32>, vector<49x64xf32>, vector<2x64xf32> -> vector<2x64xf32>
    %37 = arith.addf %32, %36 : vector<2x64xf32>
    %38 = vector.extract_strided_slice %21 {offsets = [6, 0], sizes = [2, 49], strides = [1, 1]} : vector<16x49xf32> to vector<2x49xf32>
    %c3 = arith.constant 3 : index
    %c0_21 = arith.constant 0 : index
    %c0_22 = arith.constant 0 : index
    %39 = vector.load %arg4[%c3, %c0_21, %c0_22] : memref<7x49x64xf32, #tpu.memory_space<vmem>>, vector<1x49x64xf32>
    %40 = vector.shape_cast %39 : vector<1x49x64xf32> to vector<49x64xf32>
    %cst_23 = arith.constant dense<0.000000e+00> : vector<2x64xf32>
    %41 = tpu.matmul %38, %40, %cst_23 {dimension_numbers = #tpu.dot_dimension_numbers<[1], [0], [0], [1], [0, 0, 1, 1], [], []>} : vector<2x49xf32>, vector<49x64xf32>, vector<2x64xf32> -> vector<2x64xf32>
    %42 = arith.addf %37, %41 : vector<2x64xf32>
    %43 = vector.extract_strided_slice %21 {offsets = [8, 0], sizes = [2, 49], strides = [1, 1]} : vector<16x49xf32> to vector<2x49xf32>
    %c4 = arith.constant 4 : index
    %c0_24 = arith.constant 0 : index
    %c0_25 = arith.constant 0 : index
    %44 = vector.load %arg4[%c4, %c0_24, %c0_25] : memref<7x49x64xf32, #tpu.memory_space<vmem>>, vector<1x49x64xf32>
    %45 = vector.shape_cast %44 : vector<1x49x64xf32> to vector<49x64xf32>
    %cst_26 = arith.constant dense<0.000000e+00> : vector<2x64xf32>
    %46 = tpu.matmul %43, %45, %cst_26 {dimension_numbers = #tpu.dot_dimension_numbers<[1], [0], [0], [1], [0, 0, 1, 1], [], []>} : vector<2x49xf32>, vector<49x64xf32>, vector<2x64xf32> -> vector<2x64xf32>
    %47 = arith.addf %42, %46 : vector<2x64xf32>
    %48 = vector.extract_strided_slice %21 {offsets = [10, 0], sizes = [2, 49], strides = [1, 1]} : vector<16x49xf32> to vector<2x49xf32>
    %c5 = arith.constant 5 : index
    %c0_27 = arith.constant 0 : index
    %c0_28 = arith.constant 0 : index
    %49 = vector.load %arg4[%c5, %c0_27, %c0_28] : memref<7x49x64xf32, #tpu.memory_space<vmem>>, vector<1x49x64xf32>
    %50 = vector.shape_cast %49 : vector<1x49x64xf32> to vector<49x64xf32>
    %cst_29 = arith.constant dense<0.000000e+00> : vector<2x64xf32>
    %51 = tpu.matmul %48, %50, %cst_29 {dimension_numbers = #tpu.dot_dimension_numbers<[1], [0], [0], [1], [0, 0, 1, 1], [], []>} : vector<2x49xf32>, vector<49x64xf32>, vector<2x64xf32> -> vector<2x64xf32>
    %52 = arith.addf %47, %51 : vector<2x64xf32>
    %53 = vector.extract_strided_slice %21 {offsets = [12, 0], sizes = [2, 49], strides = [1, 1]} : vector<16x49xf32> to vector<2x49xf32>
    %c6 = arith.constant 6 : index
    %c0_30 = arith.constant 0 : index
    %c0_31 = arith.constant 0 : index
    %54 = vector.load %arg4[%c6, %c0_30, %c0_31] : memref<7x49x64xf32, #tpu.memory_space<vmem>>, vector<1x49x64xf32>
    %55 = vector.shape_cast %54 : vector<1x49x64xf32> to vector<49x64xf32>
    %cst_32 = arith.constant dense<0.000000e+00> : vector<2x64xf32>
    %56 = tpu.matmul %53, %55, %cst_32 {dimension_numbers = #tpu.dot_dimension_numbers<[1], [0], [0], [1], [0, 0, 1, 1], [], []>} : vector<2x49xf32>, vector<49x64xf32>, vector<2x64xf32> -> vector<2x64xf32>
    %57 = arith.addf %52, %56 : vector<2x64xf32>
    %c0_33 = arith.constant 0 : index
    %c0_34 = arith.constant 0 : index
    %58 = vector.load %arg5[%c0_33, %c0_34] : memref<1x64xf32, #tpu.memory_space<vmem>>, vector<1x64xf32>
    %59 = vector.broadcast %58 : vector<1x64xf32> to vector<2x64xf32>
    %60 = arith.addf %57, %59 : vector<2x64xf32>
    %cst_35 = arith.constant 0.000000e+00 : f32
    %61 = vector.broadcast %cst_35 : f32 to vector<2x64xf32>
    %62 = arith.cmpf oge, %60, %61 : vector<2x64xf32>
    %63 = vector.broadcast %3 : f32 to vector<2x64xf32>
    %64 = arith.mulf %63, %60 : vector<2x64xf32>
    %65 = arith.select %62, %60, %64 : vector<2x64xi1>, vector<2x64xf32>
    %c0_36 = arith.constant 0 : index
    %c0_37 = arith.constant 0 : index
    %66 = vector.load %arg7[%c0_36, %c0_37] : memref<64x32xf32, #tpu.memory_space<vmem>>, vector<64x32xf32>
    %cst_38 = arith.constant dense<0.000000e+00> : vector<2x32xf32>
    %67 = tpu.matmul %65, %66, %cst_38 {dimension_numbers = #tpu.dot_dimension_numbers<[1], [0], [0], [1], [0, 0, 1, 1], [], []>} : vector<2x64xf32>, vector<64x32xf32>, vector<2x32xf32> -> vector<2x32xf32>
    %c0_39 = arith.constant 0 : index
    %c0_40 = arith.constant 0 : index
    %68 = vector.load %arg8[%c0_39, %c0_40] : memref<1x32xf32, #tpu.memory_space<vmem>>, vector<1x32xf32>
    %69 = vector.broadcast %68 : vector<1x32xf32> to vector<2x32xf32>
    %70 = arith.addf %67, %69 : vector<2x32xf32>
    %c0_41 = arith.constant 0 : index
    %c0_42 = arith.constant 0 : index
    %71 = vector.load %arg9[%c0_41, %c0_42] : memref<2x32xf32, #tpu.memory_space<vmem>>, vector<2x32xf32>
    tpu.vector_store %arg9[%c0_41, %c0_42], %70 {strides = array<i32>} : memref<2x32xf32, #tpu.memory_space<vmem>>, vector<2x32xf32>,
    return
  }
}

</mosaic_0001>

<bundles_post_ra>
// kernel: encoder_forward.1
= control target key start
LH: loop header
LB: loop body
LE: loop exit
PB: predicated region body
PF: predicated region fallthrough
CT: control target
= control target key end

     0   :  { %s1752_s0 = inlined_call_operand.vmem [shape: f32[64,180], index: 0, kind: input, shape index: {}]   ;;  %s1753_s1 = inlined_call_operand.vmem [shape: f32[180,49], index: 1, kind: input, shape index: {}]   ;;  %s1754_s2 = inlined_call_operand.vmem [shape: f32[1,49], index: 2, kind: input, shape index: {}]   ;;  %s1755_s3 = inlined_call_operand.<no memory space> [shape: f32[1,1], index: 3, kind: input, shape index: {}]   ;;  %s1756_s4 = inlined_call_operand.vmem [shape: f32[7,49,64], index: 4, kind: input, shape index: {}]   ;;  %s1757_s5 = inlined_call_operand.vmem [shape: f32[1,64], index: 5, kind: input, shape index: {}]   ;;  %s1758_s7 = inlined_call_operand.vmem [shape: f32[64,32], index: 7, kind: input, shape index: {}]   ;;  %s1759_s8 = inlined_call_operand.vmem [shape: f32[1,32], index: 8, kind: input, shape index: {}]   ;;  %s1760_s9 = inlined_call_operand.hbm [shape: f32[2,32], index: 9, kind: output, shape index: {}]   ;;  %s1761_s6 = inlined_call_operand.<no memory space> [shape: f32[1,1], index: 6, kind: input, shape index: {}]  }
   0x1   :  { %v14_v0 = vstv %s1755_s3  ;;  %v16_v1 = vstv %s1761_s6 }
   0x2   :  { %15 = vst [vmem:[#allocation2] sm:$0x1] %v14_v0  ;;  %17 = vst [vmem:[#allocation3] sm:$0x1] %v16_v1 }
   0x3   :  { %v72_v2 = vld [vmem:[%s1753_s1 + $0x78] sm:$0xff]  ;;  %v1264_v3 = vmov 0.0   ;;  %v71_v4 = vld [vmem:[%s1753_s1 + $0x70] sm:$0xff]  ;;  %v70_v5 = vld [vmem:[%s1753_s1 + $0x68] sm:$0xff]  ;;  %vm87_vm0 = vcmask 424960  }
   0x4   :  { %116 = vmatprep.subr.mxu0 %v1264_v3  ;;  %1097 = vmatprep.subr.mxu1 %v1264_v3  ;;  %v69_v6 = vld [vmem:[%s1753_s1 + $0x60] sm:$0xff]  ;;  %v68_v7 = vld [vmem:[%s1753_s1 + $0x58] sm:$0xff]  ;;  %v42_v8 = vld [vmem:[%s1752_s0 + $0x8] sm:$0xff] }
   0x5   :  { %117 = vmatpush1.msra.mxu0 %v72_v2  ;;  %965 = vmatprep.mubr.msk.f32.mxu0 %vm87_vm0, %v42_v8  ;;  %v67_v9 = vld [vmem:[%s1753_s1 + $0x50] sm:$0xff]  ;;  %v66_v10 = vld [vmem:[%s1753_s1 + $0x48] sm:$0xff]  ;;  %v65_v11 = vld [vmem:[%s1753_s1 + $0x40] sm:$0xff] }
   0x6   :  { %118 = vmatprep.subr.mxu0 %v1264_v3 }
   0x7   :  { %119 = vmatpush1.msra.mxu0 %v71_v4 }
   0x8   :  { %120 = vmatprep.subr.mxu0 %v1264_v3 }
   0x9   :  { %121 = vmatpush1.msra.mxu0 %v70_v5  ;;  %v37_v12 = vld [vmem:[#allocation2] sm:$0x1] }
   0xa   :  { %122 = vmatprep.subr.mxu0 %v1264_v3 }
   0xb   :  { %123 = vmatpush1.msra.mxu0 %v69_v6 }
   0xc   :  { %124 = vmatprep.subr.mxu0 %v1264_v3 }
   0xd   :  { %125 = vmatpush1.msra.mxu0 %v68_v7 }
   0xe   :  { %126 = vmatprep.subr.mxu0 %v1264_v3 }
   0xf   :  { %127 = vmatpush1.msra.mxu0 %v67_v9 }
  0x10   :  { %128 = vmatprep.subr.mxu0 %v1264_v3 }
  0x11   :  { %18 = vsyncpa [#allocation5], 0  ;;  %129 = vmatpush1.msra.mxu0 %v66_v10  ;;  %1235 = vpush %v37_v12  ;;  %v64_v13 = vld [vmem:[%s1753_s1 + $0x38] sm:$0xff]  ;;  %v63_v14 = vld [vmem:[%s1753_s1 + $0x30] sm:$0xff]  ;;  %vm112_vm1 = vcmask 1043456   ;;  %vm272_vm2 = vcmask 1040384  }
  0x12   :  { %130 = vmatprep.subr.mxu0 %v1264_v3  ;;  %v62_v15 = vld [vmem:[%s1753_s1 + $0x28] sm:$0xff]  ;;  %v61_v16 = vld [vmem:[%s1753_s1 + $0x20] sm:$0xff]  ;;  %v60_v17 = vld [vmem:[%s1753_s1 + $0x18] sm:$0xff]  ;;  %vm1265_vm3 = vmmov 0   ;;  %vm269_vm12 = vcmask 400384   ;;  %vm873_vm14 = vcmask 523264  }
  0x13   :  { %131 = vmatpush1.msra.mxu0 %v65_v11  ;;  %v59_v18 = vld [vmem:[%s1753_s1 + $0x10] sm:$0xff]  ;;  %v58_v19 = vld [vmem:[%s1753_s1 + $0x8] sm:$0xff]  ;;  %v57_v20 = vld [vmem:[%s1753_s1] sm:$0xff]  ;;  %1111 = vmatprep.mubr.msk.f32.mxu1 %vm1265_vm3, %v1264_v3  ;;  %s1266_s12 = smov [#allocation4]   ;;  %vm947_vm15 = vcmask 254976  }
  0x14   :  { %132 = vmatprep.subr.mxu0 %v1264_v3  ;;  %v79_v21 = vld [vmem:[%s1753_s1 + $0xb0] sm:$0xf]  ;;  %v78_v22 = vld [vmem:[%s1753_s1 + $0xa8] sm:$0xff]  ;;  %v77_v23 = vld [vmem:[%s1753_s1 + $0xa0] sm:$0xff]  ;;  %s955_s13 = sshll.u32 %s1266_s12, 4  ;;  %s956_s13 = int_to_ptr.vmem [resolvable:$true] %s955_s13 }
  0x15   :  { %133 = vmatpush1.msra.mxu0 %v64_v13  ;;  %v76_v24 = vld [vmem:[%s1753_s1 + $0x98] sm:$0xff]  ;;  %v75_v25 = vld [vmem:[%s1753_s1 + $0x90] sm:$0xff]  ;;  %v74_v26 = vld [vmem:[%s1753_s1 + $0x88] sm:$0xff]  ;;  %p1247_p1 = scmp.lt.s32.totalorder %s956_s13, %s956_s13 }
  0x16   :  { %134 = vmatprep.subr.mxu0 %v1264_v3  ;;  %v73_v27 = vld [vmem:[%s1753_s1 + $0x80] sm:$0xff]  ;;  %v44_v29 = vld [vmem:[%s1752_s0 + $0x18] sm:$0xff]  ;;  %v43_v30 = vld [vmem:[%s1752_s0 + $0x10] sm:$0xff] }
  0x17   :  { %135 = vmatpush1.msra.mxu0 %v63_v14  ;;  %v41_v28 = vld [vmem:[%s1752_s0] sm:$0xff]  ;;  %v46_v31 = vld [vmem:[%s1752_s0 + $0x28] sm:$0xff]  ;;  %v48_v33 = vld [vmem:[%s1752_s0 + $0x38] sm:$0xff] }
  0x18   :  { %136 = vmatprep.subr.mxu0 %v1264_v3  ;;  %v45_v32 = vld [vmem:[%s1752_s0 + $0x20] sm:$0xff]  ;;  %v47_v34 = vld [vmem:[%s1752_s0 + $0x30] sm:$0xff]  ;;  %v50_v35 = vld [vmem:[%s1752_s0 + $0x48] sm:$0xff] }
  0x19   :  { %137 = vmatpush1.msra.mxu0 %v62_v15  ;;  %v49_v36 = vld [vmem:[%s1752_s0 + $0x40] sm:$0xff]  ;;  %v52_v37 = vld [vmem:[%s1752_s0 + $0x58] sm:$0xff]  ;;  %v51_v38 = vld [vmem:[%s1752_s0 + $0x50] sm:$0xff] }
  0x1a   :  { %138 = vmatprep.subr.mxu0 %v1264_v3  ;;  %v54_v39 = vld [vmem:[%s1752_s0 + $0x68] sm:$0xff]  ;;  %v53_v40 = vld [vmem:[%s1752_s0 + $0x60] sm:$0xff]  ;;  %v56_v41 = vld [vmem:[%s1752_s0 + $0x78] sm:$0xff] }
  0x1b   :  { %139 = vmatpush1.msra.mxu0 %v61_v16  ;;  %v55_v42 = vld [vmem:[%s1752_s0 + $0x70] sm:$0xff]  ;;  %v979_v43 = vld [vmem:[%s1756_s4 + $0x68] sm:$0x1]  ;;  %v978_v44 = vld [vmem:[%s1756_s4 + $0x60] sm:$0xff] }
  0x1c   :  { %140 = vmatprep.subr.mxu0 %v1264_v3  ;;  %1098 = vmatpush3.msk.msra.mxu1 %vm272_vm2, %v979_v43  ;;  %v977_v45 = vld [vmem:[%s1756_s4 + $0x58] sm:$0xff]  ;;  %v1017_v46 = vld [vmem:[%s1756_s4 + $0x148] sm:$0x1]  ;;  %v976_v47 = vld [vmem:[%s1756_s4 + $0x50] sm:$0xff] }
  0x1d   :  { %141 = vmatpush1.msra.mxu0 %v60_v17  ;;  %1099 = vmatprep.subr.mxu1 %v1264_v3  ;;  %v1016_v48 = vld [vmem:[%s1756_s4 + $0x140] sm:$0xff]  ;;  %v975_v49 = vld [vmem:[%s1756_s4 + $0x48] sm:$0xff]  ;;  %v1015_v50 = vld [vmem:[%s1756_s4 + $0x138] sm:$0xff] }
  0x1e   :  { %142 = vmatprep.subr.mxu0 %v1264_v3  ;;  %1100 = vmatpush3.msra.mxu1 %v978_v44  ;;  %v974_v51 = vld [vmem:[%s1756_s4 + $0x40] sm:$0xff]  ;;  %v1014_v52 = vld [vmem:[%s1756_s4 + $0x130] sm:$0xff]  ;;  %v973_v53 = vld [vmem:[%s1756_s4 + $0x38] sm:$0xff] }
  0x1f   :  { %143 = vmatpush1.msra.mxu0 %v59_v18  ;;  %1101 = vmatprep.subr.mxu1 %v1264_v3  ;;  %v1013_v54 = vld [vmem:[%s1756_s4 + $0x128] sm:$0xff]  ;;  %v1012_v55 = vld [vmem:[%s1756_s4 + $0x120] sm:$0xff]  ;;  %v1011_v56 = vld [vmem:[%s1756_s4 + $0x118] sm:$0xff] }
  0x20   :  { %144 = vmatprep.subr.mxu0 %v1264_v3  ;;  %1102 = vmatpush3.msra.mxu1 %v977_v45  ;;  %v963_v2 = vld [vmem:[%s1754_s2] ss:$0 sm:$0xff]  ;;  %v257_v44 = vld [vmem:[%s1756_s4 + $0x28] sm:$0xff] }
  0x21   :  { %145 = vmatpush1.msra.mxu0 %v58_v19  ;;  %1103 = vmatprep.subr.mxu1 %v1264_v3 }
  0x22   :  { %146 = vmatprep.subr.mxu0 %v1264_v3  ;;  %1104 = vmatpush3.msra.mxu1 %v976_v47  ;;  %v255_v47 = vld [vmem:[%s1756_s4 + $0x18] sm:$0xff] }
  0x23   :  { %147 = vmatpush1.msra.mxu0 %v57_v20  ;;  %1105 = vmatprep.subr.mxu1 %v1264_v3 }
  0x24   :  { %166 = vmatprep.subr.mxu0 %v1264_v3  ;;  %1106 = vmatpush3.msra.mxu1 %v975_v49  ;;  %v253_v49 = vld [vmem:[%s1756_s4 + $0x8] sm:$0xff] }
  0x25   :  { %964 = vmatpush2.msk.msra.mxu0 %vm112_vm1, %v79_v21  ;;  %1107 = vmatprep.subr.mxu1 %v1264_v3 }
  0x26   :  { %168 = vmatprep.subr.mxu0 %v1264_v3  ;;  %1108 = vmatpush3.msra.mxu1 %v974_v51  ;;  %v990_v51 = vld [vmem:[%s1756_s4 + $0xa0] sm:$0x1] }
  0x27   :  { %169 = vmatpush2.msra.mxu0 %v78_v22  ;;  %1109 = vmatprep.subr.mxu1 %v1264_v3 }
  0x28   :  { %170 = vmatprep.subr.mxu0 %v1264_v3  ;;  %1110 = vmatpush3.msra.mxu1 %v973_v53  ;;  %v988_v53 = vld [vmem:[%s1756_s4 + $0x90] sm:$0xff] }
  0x29   :  { %171 = vmatpush2.msra.mxu0 %v77_v23  ;;  %1114 = vmatprep.subr.mxu1 %v1264_v3 }
  0x2a   :  { %172 = vmatprep.subr.mxu0 %v1264_v3 }
  0x2b   :  { %173 = vmatpush2.msra.mxu0 %v76_v24 }
  0x2c   :  { %174 = vmatprep.subr.mxu0 %v1264_v3 }
  0x2d   :  { %175 = vmatpush2.msra.mxu0 %v75_v25 }
  0x2e   :  { %176 = vmatprep.subr.mxu0 %v1264_v3 }
  0x2f   :  { %177 = vmatpush2.msra.mxu0 %v74_v26 }
  0x30   :  { %178 = vmatprep.subr.mxu0 %v1264_v3 }
  0x31   :  { %179 = vmatpush2.msra.mxu0 %v73_v27 }
  0x32   :  { %181 = vmatmul.mubr.f32.vlgmr.msra.gmra.mxu0 %v41_v28  ;;  %1182 = vmatprep.subr.mxu0 %v1264_v3 }
  0x33   :  { %966 = vmatprep.mubr.msk.f32.mxu0 %vm87_vm0, %v44_v29  ;;  %1183 = vmatpush3.msk.msra.mxu0 %vm272_vm2, %v1017_v46  ;;  %v256_v46 = vld [vmem:[%s1756_s4 + $0x20] sm:$0xff] }
  0x34   :  { %1184 = vmatprep.subr.mxu0 %v1264_v3 }
  0x35   :  { %1185 = vmatpush3.msra.mxu0 %v1016_v48  ;;  %v254_v48 = vld [vmem:[%s1756_s4 + $0x10] sm:$0xff] }
  0x36   :  { %186 = vmatmul.mubr.f32.gmra.mxu0 %v43_v30  ;;  %1186 = vmatprep.subr.mxu0 %v1264_v3 }
  0x37   :  { %967 = vmatprep.mubr.msk.f32.mxu0 %vm87_vm0, %v46_v31  ;;  %1187 = vmatpush3.msra.mxu0 %v1015_v50  ;;  %v252_v50 = vld [vmem:[%s1756_s4] sm:$0xff] }
  0x38   :  { %1188 = vmatprep.subr.mxu0 %v1264_v3 }
  0x39   :  { %1189 = vmatpush3.msra.mxu0 %v1014_v52  ;;  %v989_v52 = vld [vmem:[%s1756_s4 + $0x98] sm:$0xff] }
  0x3a   :  { %191 = vmatmul.mubr.f32.gmra.mxu0 %v45_v32  ;;  %1190 = vmatprep.subr.mxu0 %v1264_v3 }
  0x3b   :  { %968 = vmatprep.mubr.msk.f32.mxu0 %vm87_vm0, %v48_v33  ;;  %1191 = vmatpush3.msra.mxu0 %v1013_v54  ;;  %v987_v54 = vld [vmem:[%s1756_s4 + $0x88] sm:$0xff] }
  0x3c   :  { %1192 = vmatprep.subr.mxu0 %v1264_v3 }
  0x3d   :  { %1193 = vmatpush3.msra.mxu0 %v1012_v55  ;;  %v986_v55 = vld [vmem:[%s1756_s4 + $0x80] sm:$0xff] }
  0x3e   :  { %196 = vmatmul.mubr.f32.gmra.mxu0 %v47_v34  ;;  %1194 = vmatprep.subr.mxu0 %v1264_v3 }
  0x3f   :  { %969 = vmatprep.mubr.msk.f32.mxu0 %vm87_vm0, %v50_v35  ;;  %1195 = vmatpush3.msra.mxu0 %v1011_v56  ;;  %v985_v56 = vld [vmem:[%s1756_s4 + $0x78] sm:$0xff] }
  0x40   :  { %1216 = vmatprep.subr.mxu0 %v1264_v3 }
  0x42   :  { %201 = vmatmul.mubr.f32.gmra.mxu0 %v49_v36  ;;  %s1236_s23 = spop %1235 }
  0x43   :  { %970 = vmatprep.mubr.msk.f32.mxu0 %vm87_vm0, %v52_v37  ;;  %v229_v8 = vstv %s1236_s23 }
  0x46   :  { %206 = vmatmul.mubr.f32.gmra.mxu0 %v51_v38 }
  0x47   :  { %971 = vmatprep.mubr.msk.f32.mxu0 %vm87_vm0, %v54_v39 }
  0x4a   :  { %211 = vmatmul.mubr.f32.gmra.mxu0 %v53_v40 }
  0x4b   :  { %972 = vmatprep.mubr.msk.f32.mxu0 %vm87_vm0, %v56_v41 }
  0x4e   :  { %216 = vmatmul.mubr.f32.gmra.mxu0 %v55_v42  ;;  %v258_v42 = vld [vmem:[%s1756_s4 + $0x30] sm:$0x1] }
  0x4f   :  { %1196 = vmatprep.mubr.msk.f32.mxu0 %vm1265_vm3, %v1264_v3 }
  0xf2   :  { %v182_v57 = vpop.f32.mrf.mxu0 }
  0xf3   :  { %v183_v6 = vadd.f32 %v963_v2, %v182_v57  ;;  %v984_v57 = vld [vmem:[%s1756_s4 + $0x70] sm:$0xff] }
  0xf4   :  { %v184_v58 = vpop.f32.mrf.mxu0 }
  0xf5   :  { %v230_v14 = vmul.f32 %v229_v8, %v183_v6  ;;  %vm221_vm5 = vcmp.ge.f32.partialorder %v183_v6, 0.0 }
  0xf6   :  { %v187_v59 = vpop.f32.mrf.mxu0 }
  0xf7   :  { %v188_v13 = vadd.f32 %v963_v2, %v187_v59  ;;  %v238_v24 = vsel %vm221_vm5, %v183_v6, %v230_v14  ;;  %v999_v59 = vld [vmem:[%s1756_s4 + $0xd8] sm:$0x1]  ;;  %v1006_v6 = vld [vmem:[%s1756_s4 + $0x100] sm:$0xff]  ;;  %v1023_v14 = vld [vmem:[%s1756_s4 + $0x168] sm:$0xff] }
  0xf8   :  { %v189_v60 = vpop.f32.mrf.mxu0 }
  0xf9   :  { %v231_v23 = vmul.f32 %v229_v8, %v188_v13  ;;  %vm222_vm9 = vcmp.ge.f32.partialorder %v188_v13, 0.0  ;;  %v998_v60 = vld [vmem:[%s1756_s4 + $0xd0] sm:$0xff] }
  0xfa   :  { %v192_v61 = vpop.f32.mrf.mxu0 }
  0xfb   :  { %v193_v5 = vadd.f32 %v963_v2, %v192_v61  ;;  %v239_v36 = vsel %vm222_vm9, %v188_v13, %v231_v23  ;;  %v997_v61 = vld [vmem:[%s1756_s4 + $0xc8] sm:$0xff]  ;;  %v1024_v13 = vld [vmem:[%s1756_s4 + $0x170] sm:$0xff]  ;;  %v862_v23 = vld [vmem:[%s1758_s7 + $0x20] sm:$0xff] }
  0xfc   :  { %v194_v62 = vpop.f32.mrf.mxu0 }
  0xfd   :  { %v232_v11 = vmul.f32 %v229_v8, %v193_v5  ;;  %vm223_vm4 = vcmp.ge.f32.partialorder %v193_v5, 0.0  ;;  %v996_v62 = vld [vmem:[%s1756_s4 + $0xc0] sm:$0xff] }
  0xfe   :  { %v197_v63 = vpop.f32.mrf.mxu0 }
  0xff   :  { %v198_v12 = vadd.f32 %v963_v2, %v197_v63  ;;  %v240_v20 = vsel %vm223_vm4, %v193_v5, %v232_v11  ;;  %v995_v63 = vld [vmem:[%s1756_s4 + $0xb8] sm:$0xff]  ;;  %v1007_v5 = vld [vmem:[%s1756_s4 + $0x108] sm:$0xff]  ;;  %v1026_v11 = vld [vmem:[%s1756_s4 + $0x180] sm:$0x1] }
 0x100   :  { %v199_v0 = vpop.f32.mrf.mxu0  ;;  %v246_v30 = vmax.f32 %v238_v24, %v240_v20  ;;  %v865_v20 = vld [vmem:[%s1758_s7 + $0x38] sm:$0xff] }
 0x101   :  { %v233_v21 = vmul.f32 %v229_v8, %v198_v12  ;;  %vm224_vm8 = vcmp.ge.f32.partialorder %v198_v12, 0.0  ;;  %v994_v0 = vld [vmem:[%s1756_s4 + $0xb0] sm:$0xff]  ;;  %v861_v24 = vld [vmem:[%s1758_s7 + $0x18] sm:$0xff] }
 0x102   :  { %v202_v1 = vpop.f32.mrf.mxu0 }
 0x103   :  { %v203_v9 = vadd.f32 %v963_v2, %v202_v1  ;;  %v241_v33 = vsel %vm224_vm8, %v198_v12, %v233_v21  ;;  %v993_v1 = vld [vmem:[%s1756_s4 + $0xa8] sm:$0xff]  ;;  %v1025_v12 = vld [vmem:[%s1756_s4 + $0x178] sm:$0xff]  ;;  %v864_v21 = vld [vmem:[%s1758_s7 + $0x30] sm:$0xff] }
 0x104   :  { %v204_v4 = vpop.f32.mrf.mxu0  ;;  %v247_v39 = vmax.f32 %v239_v36, %v241_v33 }
 0x105   :  { %v234_v16 = vmul.f32 %v229_v8, %v203_v9  ;;  %vm225_vm6 = vcmp.ge.f32.partialorder %v203_v9, 0.0  ;;  %v1008_v4 = vld [vmem:[%s1756_s4 + $0x110] sm:$0x1] }
 0x106   :  { %v207_v7 = vpop.f32.mrf.mxu0 }
 0x107   :  { %v208_v17 = vadd.f32 %v963_v2, %v207_v7  ;;  %v242_v26 = vsel %vm225_vm6, %v203_v9, %v234_v16  ;;  %v1005_v7 = vld [vmem:[%s1756_s4 + $0xf8] sm:$0xff]  ;;  %v1003_v9 = vld [vmem:[%s1756_s4 + $0xe8] sm:$0xff] }
 0x108   :  { %v209_v10 = vpop.f32.mrf.mxu0  ;;  %v1021_v16 = vld [vmem:[%s1756_s4 + $0x158] sm:$0xff] }
 0x109   :  { %v235_v27 = vmul.f32 %v229_v8, %v208_v17  ;;  %vm226_vm10 = vcmp.ge.f32.partialorder %v208_v17, 0.0  ;;  %v1002_v10 = vld [vmem:[%s1756_s4 + $0xe0] sm:$0xff] }
 0x10a   :  { %v212_v15 = vpop.f32.mrf.mxu0 }
 0x10b   :  { %v213_v18 = vadd.f32 %v963_v2, %v212_v15  ;;  %v243_v37 = vsel %vm226_vm10, %v208_v17, %v235_v27  ;;  %v1022_v15 = vld [vmem:[%s1756_s4 + $0x160] sm:$0xff]  ;;  %v1020_v17 = vld [vmem:[%s1756_s4 + $0x150] sm:$0xff] }
 0x10c   :  { %v214_v19 = vpop.f32.mrf.mxu0  ;;  %v858_v27 = vld [vmem:[%s1758_s7] sm:$0xff] }
 0x10d   :  { %vm227_vm7 = vcmp.ge.f32.partialorder %v213_v18, 0.0  ;;  %v236_v22 = vmul.f32 %v229_v8, %v213_v18  ;;  %v39_v19 = vld [vmem:[#allocation3] sm:$0x1] }
 0x10e   :  { %v217_v25 = vpop.f32.mrf.mxu0  ;;  %1237 = vpush %v39_v19 }
 0x10f   :  { %v244_v28 = vsel %vm227_vm7, %v213_v18, %v236_v22  ;;  %v218_v29 = vadd.f32 %v963_v2, %v217_v25  ;;  %v863_v22 = vld [vmem:[%s1758_s7 + $0x28] sm:$0xff]  ;;  %v860_v25 = vld [vmem:[%s1758_s7 + $0x10] sm:$0xff] }
 0x110   :  { %v248_v31 = vmax.f32 %v242_v26, %v244_v28  ;;  %v219_v32 = vpop.f32.mrf.mxu0  ;;  %v859_v26 = vld [vmem:[%s1758_s7 + $0x8] sm:$0xff] }
 0x111   :  { %vm228_vm11 = vcmp.ge.f32.partialorder %v218_v29, 0.0  ;;  %v237_v34 = vmul.f32 %v229_v8, %v218_v29  ;;  %v1004_v8 = vld [vmem:[%s1756_s4 + $0xf0] sm:$0xff] }
 0x112   :  { %v1538_v35 = vmax.f32 %v246_v30, %v248_v31 }
 0x113   :  { %v245_v38 = vsel %vm228_vm11, %v218_v29, %v237_v34 }
 0x114   :  { %v249_v40 = vmax.f32 %v243_v37, %v245_v38  ;;  %v268_v41 = vrot.slane %v1538_v35, 2  ;;  %v429_v58 = vrot.slane %v1538_v35, 4  ;;  %v514_v2 = vrot.slane %v1538_v35, 6 }
 0x116   :  { %v1544_v43 = vmax.f32 %v247_v39, %v249_v40  ;;  %1112 = vmatmul.mubr.msk.f32.vlgmr.msra.gmra.mxu1 %vm269_vm12, %v268_v41 }
 0x117   :  { %1115 = vmatpush3.msk.msra.mxu1 %vm272_vm2, %v258_v42  ;;  %1128 = vmatprep.mubr.msk.f32.mxu1 %vm1265_vm3, %v1264_v3 }
 0x118   :  { %v684_v45 = vrot.slane %v1544_v43, 2  ;;  %1116 = vmatprep.subr.mxu1 %v1264_v3  ;;  %v769_v18 = vrot.slane %v1544_v43, 4 }
 0x119   :  { %1117 = vmatpush3.msra.mxu1 %v257_v44 }
 0x11a   :  { %1118 = vmatprep.subr.mxu1 %v1264_v3  ;;  %1197 = vmatmul.mubr.msk.f32.vlgmr.msra.gmra.mxu0 %vm269_vm12, %v684_v45  ;;  %v1029_v45 = vld [vmem:[%s1757_s5] ss:$0 sm:$0xff]  ;;  %s1242_s5 = scalar_lea.vmem %s956_s13, 32 }
 0x11b   :  { %1119 = vmatpush3.msra.mxu1 %v256_v46  ;;  %1232 = vmatprep.mubr.msk.f32.mxu0 %vm1265_vm3, %v1264_v3  ;;  %p1243_p0 = scmp.ne.s32.totalorder %s956_s13, %s1242_s5  ;;  %p1248_p2 = scmp.lt.s32.totalorder %s1242_s5, %s1242_s5 }
 0x11c   :  { %1120 = vmatprep.subr.mxu1 %v1264_v3  ;;  %1217 = vmatpush3.msra.mxu0 %v865_v20 }
 0x11d   :  { %1121 = vmatpush3.msra.mxu1 %v255_v47  ;;  %1218 = vmatprep.subr.mxu0 %v1264_v3  ;;  %p1249_p3 = por %p1248_p2, %p1247_p1 }
 0x11e   :  { %1122 = vmatprep.subr.mxu1 %v1264_v3  ;;  %1219 = vmatpush3.msra.mxu0 %v864_v21 }
 0x11f   :  { %1123 = vmatpush3.msra.mxu1 %v254_v48  ;;  %1220 = vmatprep.subr.mxu0 %v1264_v3  ;;  %p1250_p4 = pnand %p1249_p3, %p1243_p0 }
 0x120   :  { %1124 = vmatprep.subr.mxu1 %v1264_v3  ;;  %1221 = vmatpush3.msra.mxu0 %v863_v22 }
 0x121   :  { %1125 = vmatpush3.msra.mxu1 %v253_v49  ;;  %1222 = vmatprep.subr.mxu0 %v1264_v3 }
 0x122   :  { %1126 = vmatprep.subr.mxu1 %v1264_v3  ;;  %1223 = vmatpush3.msra.mxu0 %v862_v23 }
 0x123   :  { %1127 = vmatpush3.msra.mxu1 %v252_v50  ;;  %1224 = vmatprep.subr.mxu0 %v1264_v3 }
 0x124   :  { %1129 = vmatmul.mubr.msk.f32.vlgmr.msra.gmra.mxu1 %vm269_vm12, %v1538_v35  ;;  %1131 = vmatprep.subr.mxu1 %v1264_v3 }
 0x125   :  { %1132 = vmatpush3.msk.msra.mxu1 %vm272_vm2, %v990_v51  ;;  %1145 = vmatprep.mubr.msk.f32.mxu1 %vm1265_vm3, %v1264_v3 }
 0x126   :  { %1133 = vmatprep.subr.mxu1 %v1264_v3  ;;  %1225 = vmatpush3.msra.mxu0 %v861_v24 }
 0x127   :  { %1134 = vmatpush3.msra.mxu1 %v989_v52  ;;  %1226 = vmatprep.subr.mxu0 %v1264_v3  ;;  %v1030_v52 = vld [vmem:[%s1759_s8] ss:$0 sm:$0xff] }
 0x128   :  { %1135 = vmatprep.subr.mxu1 %v1264_v3  ;;  %1227 = vmatpush3.msra.mxu0 %v860_v25 }
 0x129   :  { %1136 = vmatpush3.msra.mxu1 %v988_v53  ;;  %1228 = vmatprep.subr.mxu0 %v1264_v3 }
 0x12a   :  { %1137 = vmatprep.subr.mxu1 %v1264_v3  ;;  %1229 = vmatpush3.msra.mxu0 %v859_v26 }
 0x12b   :  { %1138 = vmatpush3.msra.mxu1 %v987_v54  ;;  %1230 = vmatprep.subr.mxu0 %v1264_v3 }
 0x12c   :  { %1139 = vmatprep.subr.mxu1 %v1264_v3  ;;  %1231 = vmatpush3.msra.mxu0 %v858_v27 }
 0x12d   :  { %1140 = vmatpush3.msra.mxu1 %v986_v55 }
 0x12e   :  { %1141 = vmatprep.subr.mxu1 %v1264_v3 }
 0x12f   :  { %1142 = vmatpush3.msra.mxu1 %v985_v56 }
 0x130   :  { %1143 = vmatprep.subr.mxu1 %v1264_v3 }
 0x131   :  { %1144 = vmatpush3.msra.mxu1 %v984_v57 }
 0x132   :  { %1146 = vmatmul.mubr.msk.f32.vlgmr.msra.gmra.mxu1 %vm269_vm12, %v429_v58  ;;  %1148 = vmatprep.subr.mxu1 %v1264_v3 }
 0x133   :  { %1149 = vmatpush3.msk.msra.mxu1 %vm272_vm2, %v999_v59  ;;  %1162 = vmatprep.mubr.msk.f32.mxu1 %vm1265_vm3, %v1264_v3 }
 0x134   :  { %1150 = vmatprep.subr.mxu1 %v1264_v3 }
 0x135   :  { %1151 = vmatpush3.msra.mxu1 %v998_v60 }
 0x136   :  { %1152 = vmatprep.subr.mxu1 %v1264_v3 }
 0x137   :  { %1153 = vmatpush3.msra.mxu1 %v997_v61 }
 0x138   :  { %1154 = vmatprep.subr.mxu1 %v1264_v3 }
 0x139   :  { %1155 = vmatpush3.msra.mxu1 %v996_v62 }
 0x13a   :  { %1156 = vmatprep.subr.mxu1 %v1264_v3 }
 0x13b   :  { %1157 = vmatpush3.msra.mxu1 %v995_v63 }
 0x13c   :  { %1158 = vmatprep.subr.mxu1 %v1264_v3 }
 0x13d   :  { %1159 = vmatpush3.msra.mxu1 %v994_v0 }
 0x13e   :  { %1160 = vmatprep.subr.mxu1 %v1264_v3 }
 0x13f   :  { %1161 = vmatpush3.msra.mxu1 %v993_v1  ;;  %s1238_s29 = spop %1237 }
 0x140   :  { %1163 = vmatmul.mubr.msk.f32.vlgmr.msra.gmra.mxu1 %vm269_vm12, %v514_v2  ;;  %1165 = vmatprep.subr.mxu1 %v1264_v3  ;;  %v855_v48 = vstv %s1238_s29 }
 0x141   :  { %1166 = vmatpush3.msk.msra.mxu1 %vm272_vm2, %v1008_v4  ;;  %1179 = vmatprep.mubr.msk.f32.mxu1 %vm1265_vm3, %v1264_v3 }
 0x142   :  { %1167 = vmatprep.subr.mxu1 %v1264_v3 }
 0x143   :  { %1168 = vmatpush3.msra.mxu1 %v1007_v5 }
 0x144   :  { %1169 = vmatprep.subr.mxu1 %v1264_v3 }
 0x145   :  { %1170 = vmatpush3.msra.mxu1 %v1006_v6 }
 0x146   :  { %1171 = vmatprep.subr.mxu1 %v1264_v3 }
 0x147   :  { %1172 = vmatpush3.msra.mxu1 %v1005_v7 }
 0x148   :  { %1173 = vmatprep.subr.mxu1 %v1264_v3 }
 0x149   :  { %1174 = vmatpush3.msra.mxu1 %v1004_v8 }
 0x14a   :  { %1175 = vmatprep.subr.mxu1 %v1264_v3 }
 0x14b   :  { %1176 = vmatpush3.msra.mxu1 %v1003_v9 }
 0x14c   :  { %1177 = vmatprep.subr.mxu1 %v1264_v3 }
 0x14d   :  { %1178 = vmatpush3.msra.mxu1 %v1002_v10 }
 0x14e   :  { %1180 = vmatmul.mubr.msk.f32.vlgmr.msra.gmra.mxu1 %vm269_vm12, %v1544_v43  ;;  %1199 = vmatprep.subr.mxu1 %v1264_v3 }
 0x14f   :  { %1200 = vmatpush3.msk.msra.mxu1 %vm272_vm2, %v1026_v11  ;;  %1213 = vmatprep.mubr.msk.f32.mxu1 %vm1265_vm3, %v1264_v3 }
 0x150   :  { %1201 = vmatprep.subr.mxu1 %v1264_v3 }
 0x151   :  { %1202 = vmatpush3.msra.mxu1 %v1025_v12 }
 0x152   :  { %1203 = vmatprep.subr.mxu1 %v1264_v3 }
 0x153   :  { %1204 = vmatpush3.msra.mxu1 %v1024_v13 }
 0x154   :  { %1205 = vmatprep.subr.mxu1 %v1264_v3 }
 0x155   :  { %1206 = vmatpush3.msra.mxu1 %v1023_v14 }
 0x156   :  { %1207 = vmatprep.subr.mxu1 %v1264_v3 }
 0x157   :  { %1208 = vmatpush3.msra.mxu1 %v1022_v15 }
 0x158   :  { %1209 = vmatprep.subr.mxu1 %v1264_v3 }
 0x159   :  { %1210 = vmatpush3.msra.mxu1 %v1021_v16 }
 0x15a   :  { %1211 = vmatprep.subr.mxu1 %v1264_v3 }
 0x15b   :  { %1212 = vmatpush3.msra.mxu1 %v1020_v17 }
 0x15c   :  { %1214 = vmatmul.mubr.msk.f32.vlgmr.msra.gmra.mxu1 %vm269_vm12, %v769_v18 }
 0x1d6   :  { %v342_v28 = vpop.f32.mrf.mxu1 }
 0x1d8   :  { %v1113_v29 = vpop.f32.mrf.mxu1 }
 0x1da   :  { %v756_v30 = vpop.f32.mrf.mxu0 }
 0x1dc   :  { %v1198_v31 = vpop.f32.mrf.mxu0 }
 0x1e4   :  { %v417_v32 = vpop.f32.mrf.mxu1 }
 0x1e5   :  { %v418_v40 = vadd.f32 %v417_v32, %v342_v28 }
 0x1e6   :  { %v1130_v33 = vpop.f32.mrf.mxu1 }
 0x1f2   :  { %v501_v34 = vpop.f32.mrf.mxu1 }
 0x1f3   :  { %v505_v41 = vadd.f32 %v501_v34, %v418_v40 }
 0x1f4   :  { %v1147_v35 = vpop.f32.mrf.mxu1 }
 0x200   :  { %v586_v36 = vpop.f32.mrf.mxu1 }
 0x201   :  { %v590_v3 = vadd.f32 %v586_v36, %v505_v41 }
 0x202   :  { %v1164_v37 = vpop.f32.mrf.mxu1 }
 0x20e   :  { %v671_v38 = vpop.f32.mrf.mxu1 }
 0x20f   :  { %v675_v42 = vadd.f32 %v671_v38, %v590_v3 }
 0x210   :  { %v1181_v39 = vpop.f32.mrf.mxu1 }
 0x211   :  { %v760_v43 = vadd.f32 %v756_v30, %v675_v42 }
 0x21c   :  { %v841_v44 = vpop.f32.mrf.mxu1 }
 0x21d   :  { %v845_v46 = vadd.f32 %v841_v44, %v760_v43 }
 0x21e   :  { %v1215_v47 = vpop.f32.mrf.mxu1 }
 0x21f   :  { %v853_v49 = vadd.f32 %v1029_v45, %v845_v46 }
 0x221   :  { %vm854_vm13 = vcmp.ge.f32.partialorder %v853_v49, 0.0  ;;  %v856_v50 = vmul.f32 %v855_v48, %v853_v49 }
 0x223   :  { %v857_v51 = vsel %vm854_vm13, %v853_v49, %v856_v50 }
 0x224   :  { %1233 = vmatmul.mubr.msk.f32.vlgmr.msra.gmra.mxu0 %vm873_vm14, %v857_v51 }
 0x2e4   :  { %v943_v53 = vpop.f32.mrf.mxu0 }
 0x2e5   :  { %v944_v54 = vadd.f32 %v1030_v52, %v943_v53 }
 0x2e6   :  { %v1234_v55 = vpop.f32.mrf.mxu0 }
 0x2e7   :  { %948 = vst.msk [vmem:[#allocation4] sm:$0x3] %vm947_vm15, %v944_v54 }
 0x2e8   :  { %1253 = shalt.err (!%p1250_p4)
}
 0x2e9   :  { %958 = dma.vmem_to_hbm [thread:$0]  %s956_s13, 32, %s1760_s9, [#allocation5]  }
 0x2ea   :  { %1262 = dma.done.wait [#allocation5], 32  }
 0x2eb   :  { %1263 = vsyncadd [#allocation5], 4294967264 }
 0x2ec   :  { %962 = vsyncpa [#allocation5], 1 }

</bundles_post_ra>
